<compile_context>
chip_gen: v7x
topology: tpu7x:2x2x1
jax: 0.10.0
libtpu: 0.0.40
codegen_flags: <defaults>
</compile_context>

<pallas_src>
import numpy as np
import jax
import jax.numpy as jnp
from jax import lax
from jax.experimental import pallas as pl
from jax.experimental.pallas import tpu as pltpu

LANES = 128
SUB_ROWS = 64                             # inner compute sub-block: (64, 128)
TARGET_CHUNK_BYTES = 4 * 1024 * 1024      # per-DMA window; x2 buffers = 8 MiB VMEM
VMEM_LIMIT_BYTES = 32 * 1024 * 1024       # fits scoped/physical VMEM on v5e/v6e/v7x


def _cdiv(a, b):
    return -(-a // b)


def _round_up(a, b):
    return _cdiv(a, b) * b


def _make_kernel(num_srcs, chunk_rows, sub_rows):
    """Streaming sum-of-squares kernel over a flattened 1-D tile schedule."""
    R = chunk_rows
    SUB = sub_rows
    n_sub = R // SUB
    unroll = True if n_sub <= 8 else 4

    def kernel(*args):
        (src_id_ref, row_start_ref, vlo_ref, vhi_ref,
         out_id_ref, first_ref, last_ref) = args[:7]
        hbm = args[7:7 + num_srcs]
        o_ref = args[7 + num_srcs]
        buf, sem, acc = args[7 + num_srcs + 1:]

        t = pl.program_id(0)
        nt = pl.num_programs(0)
        slot = lax.rem(t, 2)

        def start_fetch(tile, slot_):
            rs = row_start_ref[tile]
            sid = src_id_ref[tile]
            for k in range(num_srcs):          # static unrolled source switch
                @pl.when(sid == k)
                def _(k=k):
                    pltpu.make_async_copy(
                        hbm[k].at[pl.ds(rs, R)],
                        buf.at[slot_],
                        sem.at[slot_],
                    ).start()

        # Prologue: issue the DMA for tile 0.
        @pl.when(t == 0)
        def _():
            start_fetch(0, 0)

        # Wait for this tile's window.
        pltpu.make_async_copy(
            hbm[0].at[pl.ds(0, R)], buf.at[slot], sem.at[slot]
        ).wait()

        # Queue the next window into the other slot so its DMA overlaps
        # this tile's compute.
        @pl.when(t + 1 < nt)
        def _():
            start_fetch(t + 1, 1 - slot)

        # Per-parameter partial-sum accumulator, vreg shaped (8, 128).
        @pl.when(first_ref[t] == 1)
        def _():
            acc[...] = jnp.zeros_like(acc)

        cur = buf.at[slot]
        vlo = vlo_ref[t]
        vhi = vhi_ref[t]
        full = jnp.logical_and(vlo == 0, vhi == R)

        # Hot path: whole window valid -> fused square + accumulate, no mask.
        @pl.when(full)
        def _():
            def body(j, carry):
                r0 = pl.multiple_of(j * SUB, SUB)
                x = cur[pl.ds(r0, SUB), :].astype(jnp.float32)
                acc[...] += jnp.sum(
                    (x * x).reshape(SUB // 8, 8, LANES), axis=0)
                return carry
            lax.fori_loop(0, n_sub, body, 0, unroll=unroll)

        # Tail / slab windows: mask rows outside [vlo, vhi).
        @pl.when(jnp.logical_not(full))
        def _():
            row_ids = lax.broadcasted_iota(jnp.int32, (SUB, LANES), 0)

            def body(j, carry):
                r0 = pl.multiple_of(j * SUB, SUB)
                x = cur[pl.ds(r0, SUB), :].astype(jnp.float32)
                r = row_ids + r0
                m = jnp.logical_and(r >= vlo, r < vhi)
                x = jnp.where(m, x, 0.0)
                acc[...] += jnp.sum(
                    (x * x).reshape(SUB // 8, 8, LANES), axis=0)
                return carry
            lax.fori_loop(0, n_sub, body, 0, unroll=unroll)

        # One cross-lane reduction per parameter; scalar write to SMEM output.
        @pl.when(last_ref[t] == 1)
        def _():
            o_ref[out_id_ref[t], 0] = jnp.sum(acc[...])

    return kernel


def _group_sum_squares(weights):
    """weights: list of arrays sharing one dtype.
    Returns a (P,) f32 array of per-weight sums of squares via one pallas_call."""
    dtype = jnp.dtype(weights[0].dtype)
    itemsize = dtype.itemsize
    sizes = [int(w.size) for w in weights]
    rows = [_cdiv(n, LANES) for n in sizes]
    assert all(n > 0 for n in sizes)

    # Window size (rows of 128 lanes per DMA / grid step), adapted down for
    # small models so we don't stream mostly padding.
    r_target = max(SUB_ROWS,
                   (TARGET_CHUNK_BYTES // (LANES * itemsize)) // SUB_ROWS * SUB_ROWS)
    aligned_rows = [r for n, r in zip(sizes, rows)
                    if n % LANES == 0 and r >= SUB_ROWS]
    if aligned_rows:
        chunk_rows = max(SUB_ROWS,
                         min(r_target, (max(aligned_rows) // SUB_ROWS) * SUB_ROWS))
    else:
        chunk_rows = max(SUB_ROWS, min(r_target, _round_up(max(rows), SUB_ROWS)))

    # Partition: zero-copy "direct" params vs small/unaligned slab params.
    direct, small = [], []
    for i, (n, r) in enumerate(zip(sizes, rows)):
        if n % LANES == 0 and r >= chunk_rows:
            direct.append(i)
        else:
            small.append(i)

    hbm_inputs = []                 # (rows_k, 128) arrays, native dtype
    param_plan = [None] * len(weights)   # i -> (src_index, base_row, valid_rows)

    for i in direct:
        # Pure bitcast reshape of the original weight: no extra HBM traffic.
        hbm_inputs.append(jnp.reshape(weights[i], (rows[i], LANES)))
        param_plan[i] = (len(hbm_inputs) - 1, 0, rows[i])

    if small:
        slab_src = len(hbm_inputs)
        slab_parts, off = [], 0
        for i in small:
            alloc = _round_up(max(rows[i], 1), 8)
            flat = jnp.reshape(weights[i], (-1,))
            flat = jnp.pad(flat, (0, alloc * LANES - sizes[i]))  # zeros: norm-safe
            slab_parts.append(jnp.reshape(flat, (alloc, LANES)))
            param_plan[i] = (slab_src, off, alloc)
            off += alloc
        # Pad the slab so every window stays in bounds.
        need = 0
        for i in small:
            _, base_i, alloc_i = param_plan[i]
            need = max(need, base_i + _cdiv(alloc_i, chunk_rows) * chunk_rows)
        if need > off:
            slab_parts.append(jnp.zeros((need - off, LANES), dtype=dtype))
        hbm_inputs.append(jnp.concatenate(slab_parts, axis=0))

    ref_rows = [int(a.shape[0]) for a in hbm_inputs]

    # Flattened 1-D tile schedule + scalar-prefetch tables.
    src_id, row_start, vlo, vhi, out_id, first, last = ([] for _ in range(7))
    for i, (src, base, vrows) in enumerate(param_plan):
        ntiles = _cdiv(vrows, chunk_rows)
        assert ntiles >= 1
        for k in range(ntiles):
            u = k * chunk_rows
            s = min(base + u, ref_rows[src] - chunk_rows)   # in-bounds clamp
            assert s >= 0
            src_id.append(src)
            row_start.append(s)
            vlo.append((base + u) - s)                      # de-overlap mask lo
            vhi.append(min(chunk_rows, base + vrows - s))   # end-of-param mask hi
            out_id.append(i)
            first.append(1 if k == 0 else 0)
            last.append(1 if k == ntiles - 1 else 0)

    total_tiles = len(src_id)
    num_srcs = len(hbm_inputs)
    P = len(weights)

    tables = [jnp.asarray(np.asarray(a, dtype=np.int32))
              for a in (src_id, row_start, vlo, vhi, out_id, first, last)]

    total_elems = sum(sizes)
    cost = pl.CostEstimate(
        flops=2 * total_elems,
        transcendentals=0,
        bytes_accessed=total_elems * itemsize + P * 4,
    )

    ssq = pl.pallas_call(
        _make_kernel(num_srcs, chunk_rows, SUB_ROWS),
        out_shape=jax.ShapeDtypeStruct((P, 1), jnp.float32),
        grid_spec=pltpu.PrefetchScalarGridSpec(
            num_scalar_prefetch=7,
            grid=(total_tiles,),
            in_specs=[pl.BlockSpec(memory_space=pl.ANY)] * num_srcs,
            out_specs=pl.BlockSpec(memory_space=pltpu.MemorySpace.SMEM),
            scratch_shapes=[
                pltpu.VMEM((2, chunk_rows, LANES), dtype),   # double-buffered windows
                pltpu.SemaphoreType.DMA((2,)),
                pltpu.VMEM((8, LANES), jnp.float32),         # per-param partial sums
            ],
        ),
        compiler_params=pltpu.CompilerParams(
            dimension_semantics=("arbitrary",),
            vmem_limit_bytes=VMEM_LIMIT_BYTES,
        ),
        cost_estimate=cost,
    )(*tables, *hbm_inputs)

    return ssq[:, 0]


def _regularization_loss_impl(weights, weight_decay):
    # Group by dtype (each group gets one fused pallas_call).
    groups = {}
    for w in weights:
        groups.setdefault(jnp.dtype(w.dtype), []).append(w)
    total = jnp.float32(0.0)
    for ws in groups.values():
        ssq = _group_sum_squares(ws)
        total = total + jnp.sum(jnp.sqrt(ssq))
    return weight_decay.astype(jnp.float32) * total


_regularization_loss_jit = jax.jit(_regularization_loss_impl)


def regularization_loss(named_params, weight_decay):
    """Mirror of Regularization.forward: weight_decay * sum of L2 norms of
    parameters whose name contains 'weight' (p=2 only, as in the module)."""
    weights = tuple(p for name, p in named_params if "weight" in name)
    if not weights:
        return jnp.float32(0.0)
    return _regularization_loss_jit(weights, jnp.float32(weight_decay))


def _make_synthetic_model_params(key):
    """Deterministic synthetic 'model' parameters (conv + linears + biases).
    Chosen so the demo exercises all kernel paths: zero-copy multi-window with
    a clamped/masked tail (fc1), zero-copy single window (fc2), and the padded
    slab path for small/unaligned weights (conv1, out)."""
    k = jax.random.split(key, 6)
    return [
        ("conv1.weight", jax.random.normal(k[0], (8, 4, 3, 3), jnp.float32)),
        ("conv1.bias",   jax.random.normal(k[1], (8,), jnp.float32)),
        ("fc1.weight",   jax.random.normal(k[2], (96, 128), jnp.float32)),
        ("fc1.bias",     jax.random.normal(k[3], (96,), jnp.float32)),
        ("fc2.weight",   jax.random.normal(k[4], (64, 128), jnp.float32)),
        ("out.weight",   jax.random.normal(k[5], (10, 33), jnp.float32)),
    ]


if __name__ == "__main__":
    key = jax.random.PRNGKey(0)
    named_params = _make_synthetic_model_params(key)
    weight_decay = 0.01

    reg_loss = regularization_loss(named_params, weight_decay)
    reg_loss = jax.block_until_ready(reg_loss)

    # Pure-JAX reference check (same semantics as the PyTorch module, p=2).
    ref = weight_decay * sum(
        jnp.sqrt(jnp.sum(jnp.square(p.astype(jnp.float32))))
        for name, p in named_params
        if "weight" in name
    )
    assert jnp.allclose(reg_loss, ref, rtol=1e-5, atol=1e-5), (reg_loss, ref)

    print("KERNEL_OK")
</pallas_src>

<mosaic_0001>
module attributes {stable_mosaic.version = 11 : i64} {
  func.func @kernel(%arg0: i32, %arg1: memref<5xi32, #tpu.memory_space<smem>>, %arg2: memref<5xi32, #tpu.memory_space<smem>>, %arg3: memref<5xi32, #tpu.memory_space<smem>>, %arg4: memref<5xi32, #tpu.memory_space<smem>>, %arg5: memref<5xi32, #tpu.memory_space<smem>>, %arg6: memref<5xi32, #tpu.memory_space<smem>>, %arg7: memref<5xi32, #tpu.memory_space<smem>>, %arg8: memref<96x128xf32, #tpu.memory_space<any>>, %arg9: memref<64x128xf32, #tpu.memory_space<any>>, %arg10: memref<72x128xf32, #tpu.memory_space<any>>, %arg11: memref<4x1xf32, #tpu.memory_space<smem>>, %arg12: memref<2x64x128xf32, #tpu.memory_space<vmem>>, %arg13: memref<2x!tpu.dma_semaphore, #tpu.memory_space<semaphore_mem>>, %arg14: memref<8x128xf32, #tpu.memory_space<vmem>>) attributes {dimension_semantics = [#tpu.dimension_semantics<arbitrary>], iteration_bounds = array<i64: 5>, scalar_prefetch = 7 : i64, scratch_operands = 3 : i64, tpu.core_type = #tpu.core_type<tc>, window_params = [{}, {}, {}, {transform_indices = @transform_3, window_bounds = array<i64: 4, 1>}]} {
    %c2_i32 = arith.constant 2 : i32
    %0 = arith.remsi %arg0, %c2_i32 : i32
    %c0_i32 = arith.constant 0 : i32
    %1 = arith.cmpi eq, %arg0, %c0_i32 : i32
    %2 = arith.extui %1 : i1 to i32
    %c0_i32_0 = arith.constant 0 : i32
    %3 = arith.cmpi ne, %2, %c0_i32_0 : i32
    scf.if %3 {
      %c0 = arith.constant 0 : index
      %35 = memref.load %arg2[%c0] : memref<5xi32, #tpu.memory_space<smem>>
      %c0_13 = arith.constant 0 : index
      %36 = memref.load %arg1[%c0_13] : memref<5xi32, #tpu.memory_space<smem>>
      %c0_i32_14 = arith.constant 0 : i32
      %37 = arith.cmpi eq, %36, %c0_i32_14 : i32
      %38 = arith.extui %37 : i1 to i32
      %c0_i32_15 = arith.constant 0 : i32
      %39 = arith.cmpi ne, %38, %c0_i32_15 : i32
      scf.if %39 {
        %c0_i32_20 = arith.constant 0 : i32
        %c0_i32_21 = arith.constant 0 : i32
        %c0_i32_22 = arith.constant 0 : i32
        %46 = tpu.memref_slice %arg8[%35, %c0_i32_22] : memref<96x128xf32, #tpu.memory_space<any>> -> memref<64x128xf32, #tpu.memory_space<any>>
        %c0_i32_23 = arith.constant 0 : i32
        %c0_i32_24 = arith.constant 0 : i32
        %47 = tpu.memref_slice %arg12[%c0_i32_20, %c0_i32_23, %c0_i32_24] : memref<2x64x128xf32, #tpu.memory_space<vmem>> -> memref<1x64x128xf32, #tpu.memory_space<vmem>>
        %48 = tpu.memref_squeeze %47 : memref<1x64x128xf32, #tpu.memory_space<vmem>> -> memref<64x128xf32, #tpu.memory_space<vmem>>
        %49 = tpu.memref_slice %arg13[%c0_i32_21] : memref<2x!tpu.dma_semaphore, #tpu.memory_space<semaphore_mem>> -> memref<1x!tpu.dma_semaphore, #tpu.memory_space<semaphore_mem>>
        %50 = tpu.memref_squeeze %49 : memref<1x!tpu.dma_semaphore, #tpu.memory_space<semaphore_mem>> -> memref<!tpu.dma_semaphore, #tpu.memory_space<semaphore_mem>>
        tpu.enqueue_dma source(%46 : memref<64x128xf32, #tpu.memory_space<any>>) target(%48 : memref<64x128xf32, #tpu.memory_space<vmem>>) target_semaphore(%50 : memref<!tpu.dma_semaphore, #tpu.memory_space<semaphore_mem>>)
      } else {
      }
      %c1_i32_16 = arith.constant 1 : i32
      %40 = arith.cmpi eq, %36, %c1_i32_16 : i32
      %41 = arith.extui %40 : i1 to i32
      %c0_i32_17 = arith.constant 0 : i32
      %42 = arith.cmpi ne, %41, %c0_i32_17 : i32
      scf.if %42 {
        %c0_i32_20 = arith.constant 0 : i32
        %c0_i32_21 = arith.constant 0 : i32
        %c0_i32_22 = arith.constant 0 : i32
        %46 = tpu.memref_slice %arg9[%35, %c0_i32_22] : memref<64x128xf32, #tpu.memory_space<any>> -> memref<64x128xf32, #tpu.memory_space<any>>
        %c0_i32_23 = arith.constant 0 : i32
        %c0_i32_24 = arith.constant 0 : i32
        %47 = tpu.memref_slice %arg12[%c0_i32_20, %c0_i32_23, %c0_i32_24] : memref<2x64x128xf32, #tpu.memory_space<vmem>> -> memref<1x64x128xf32, #tpu.memory_space<vmem>>
        %48 = tpu.memref_squeeze %47 : memref<1x64x128xf32, #tpu.memory_space<vmem>> -> memref<64x128xf32, #tpu.memory_space<vmem>>
        %49 = tpu.memref_slice %arg13[%c0_i32_21] : memref<2x!tpu.dma_semaphore, #tpu.memory_space<semaphore_mem>> -> memref<1x!tpu.dma_semaphore, #tpu.memory_space<semaphore_mem>>
        %50 = tpu.memref_squeeze %49 : memref<1x!tpu.dma_semaphore, #tpu.memory_space<semaphore_mem>> -> memref<!tpu.dma_semaphore, #tpu.memory_space<semaphore_mem>>
        tpu.enqueue_dma source(%46 : memref<64x128xf32, #tpu.memory_space<any>>) target(%48 : memref<64x128xf32, #tpu.memory_space<vmem>>) target_semaphore(%50 : memref<!tpu.dma_semaphore, #tpu.memory_space<semaphore_mem>>)
      } else {
      }
      %c2_i32_18 = arith.constant 2 : i32
      %43 = arith.cmpi eq, %36, %c2_i32_18 : i32
      %44 = arith.extui %43 : i1 to i32
      %c0_i32_19 = arith.constant 0 : i32
      %45 = arith.cmpi ne, %44, %c0_i32_19 : i32
      scf.if %45 {
        %c0_i32_20 = arith.constant 0 : i32
        %c0_i32_21 = arith.constant 0 : i32
        %c0_i32_22 = arith.constant 0 : i32
        %46 = tpu.memref_slice %arg10[%35, %c0_i32_22] : memref<72x128xf32, #tpu.memory_space<any>> -> memref<64x128xf32, #tpu.memory_space<any>>
        %c0_i32_23 = arith.constant 0 : i32
        %c0_i32_24 = arith.constant 0 : i32
        %47 = tpu.memref_slice %arg12[%c0_i32_20, %c0_i32_23, %c0_i32_24] : memref<2x64x128xf32, #tpu.memory_space<vmem>> -> memref<1x64x128xf32, #tpu.memory_space<vmem>>
        %48 = tpu.memref_squeeze %47 : memref<1x64x128xf32, #tpu.memory_space<vmem>> -> memref<64x128xf32, #tpu.memory_space<vmem>>
        %49 = tpu.memref_slice %arg13[%c0_i32_21] : memref<2x!tpu.dma_semaphore, #tpu.memory_space<semaphore_mem>> -> memref<1x!tpu.dma_semaphore, #tpu.memory_space<semaphore_mem>>
        %50 = tpu.memref_squeeze %49 : memref<1x!tpu.dma_semaphore, #tpu.memory_space<semaphore_mem>> -> memref<!tpu.dma_semaphore, #tpu.memory_space<semaphore_mem>>
        tpu.enqueue_dma source(%46 : memref<64x128xf32, #tpu.memory_space<any>>) target(%48 : memref<64x128xf32, #tpu.memory_space<vmem>>) target_semaphore(%50 : memref<!tpu.dma_semaphore, #tpu.memory_space<semaphore_mem>>)
      } else {
      }
    } else {
    }
    %c0_i32_1 = arith.constant 0 : i32
    %c0_i32_2 = arith.constant 0 : i32
    %4 = tpu.memref_slice %arg8[%c0_i32_1, %c0_i32_2] : memref<96x128xf32, #tpu.memory_space<any>> -> memref<64x128xf32, #tpu.memory_space<any>>
    %c0_i32_3 = arith.constant 0 : i32
    %c0_i32_4 = arith.constant 0 : i32
    %5 = tpu.memref_slice %arg12[%0, %c0_i32_3, %c0_i32_4] : memref<2x64x128xf32, #tpu.memory_space<vmem>> -> memref<1x64x128xf32, #tpu.memory_space<vmem>>
    %6 = tpu.memref_squeeze %5 : memref<1x64x128xf32, #tpu.memory_space<vmem>> -> memref<64x128xf32, #tpu.memory_space<vmem>>
    %7 = tpu.memref_slice %arg13[%0] : memref<2x!tpu.dma_semaphore, #tpu.memory_space<semaphore_mem>> -> memref<1x!tpu.dma_semaphore, #tpu.memory_space<semaphore_mem>>
    %8 = tpu.memref_squeeze %7 : memref<1x!tpu.dma_semaphore, #tpu.memory_space<semaphore_mem>> -> memref<!tpu.dma_semaphore, #tpu.memory_space<semaphore_mem>>
    tpu.wait_dma2 semaphore(%8 : memref<!tpu.dma_semaphore, #tpu.memory_space<semaphore_mem>>) src(%4 : memref<64x128xf32, #tpu.memory_space<any>>) dst(%6 : memref<64x128xf32, #tpu.memory_space<vmem>>)
    %c1_i32 = arith.constant 1 : i32
    %9 = arith.addi %arg0, %c1_i32 : i32
    %c5_i32 = arith.constant 5 : i32
    %10 = arith.cmpi slt, %9, %c5_i32 : i32
    %11 = arith.extui %10 : i1 to i32
    %c0_i32_5 = arith.constant 0 : i32
    %12 = arith.cmpi ne, %11, %c0_i32_5 : i32
    scf.if %12 {
      %c1_i32_13 = arith.constant 1 : i32
      %35 = arith.addi %arg0, %c1_i32_13 : i32
      %c1_i32_14 = arith.constant 1 : i32
      %36 = arith.subi %c1_i32_14, %0 : i32
      %37 = arith.index_cast %35 : i32 to index
      %38 = memref.load %arg2[%37] : memref<5xi32, #tpu.memory_space<smem>>
      %39 = arith.index_cast %35 : i32 to index
      %40 = memref.load %arg1[%39] : memref<5xi32, #tpu.memory_space<smem>>
      %c0_i32_15 = arith.constant 0 : i32
      %41 = arith.cmpi eq, %40, %c0_i32_15 : i32
      %42 = arith.extui %41 : i1 to i32
      %c0_i32_16 = arith.constant 0 : i32
      %43 = arith.cmpi ne, %42, %c0_i32_16 : i32
      scf.if %43 {
        %c0_i32_21 = arith.constant 0 : i32
        %50 = tpu.memref_slice %arg8[%38, %c0_i32_21] : memref<96x128xf32, #tpu.memory_space<any>> -> memref<64x128xf32, #tpu.memory_space<any>>
        %c0_i32_22 = arith.constant 0 : i32
        %c0_i32_23 = arith.constant 0 : i32
        %51 = tpu.memref_slice %arg12[%36, %c0_i32_22, %c0_i32_23] : memref<2x64x128xf32, #tpu.memory_space<vmem>> -> memref<1x64x128xf32, #tpu.memory_space<vmem>>
        %52 = tpu.memref_squeeze %51 : memref<1x64x128xf32, #tpu.memory_space<vmem>> -> memref<64x128xf32, #tpu.memory_space<vmem>>
        %53 = tpu.memref_slice %arg13[%36] : memref<2x!tpu.dma_semaphore, #tpu.memory_space<semaphore_mem>> -> memref<1x!tpu.dma_semaphore, #tpu.memory_space<semaphore_mem>>
        %54 = tpu.memref_squeeze %53 : memref<1x!tpu.dma_semaphore, #tpu.memory_space<semaphore_mem>> -> memref<!tpu.dma_semaphore, #tpu.memory_space<semaphore_mem>>
        tpu.enqueue_dma source(%50 : memref<64x128xf32, #tpu.memory_space<any>>) target(%52 : memref<64x128xf32, #tpu.memory_space<vmem>>) target_semaphore(%54 : memref<!tpu.dma_semaphore, #tpu.memory_space<semaphore_mem>>)
      } else {
      }
      %c1_i32_17 = arith.constant 1 : i32
      %44 = arith.cmpi eq, %40, %c1_i32_17 : i32
      %45 = arith.extui %44 : i1 to i32
      %c0_i32_18 = arith.constant 0 : i32
      %46 = arith.cmpi ne, %45, %c0_i32_18 : i32
      scf.if %46 {
        %c0_i32_21 = arith.constant 0 : i32
        %50 = tpu.memref_slice %arg9[%38, %c0_i32_21] : memref<64x128xf32, #tpu.memory_space<any>> -> memref<64x128xf32, #tpu.memory_space<any>>
        %c0_i32_22 = arith.constant 0 : i32
        %c0_i32_23 = arith.constant 0 : i32
        %51 = tpu.memref_slice %arg12[%36, %c0_i32_22, %c0_i32_23] : memref<2x64x128xf32, #tpu.memory_space<vmem>> -> memref<1x64x128xf32, #tpu.memory_space<vmem>>
        %52 = tpu.memref_squeeze %51 : memref<1x64x128xf32, #tpu.memory_space<vmem>> -> memref<64x128xf32, #tpu.memory_space<vmem>>
        %53 = tpu.memref_slice %arg13[%36] : memref<2x!tpu.dma_semaphore, #tpu.memory_space<semaphore_mem>> -> memref<1x!tpu.dma_semaphore, #tpu.memory_space<semaphore_mem>>
        %54 = tpu.memref_squeeze %53 : memref<1x!tpu.dma_semaphore, #tpu.memory_space<semaphore_mem>> -> memref<!tpu.dma_semaphore, #tpu.memory_space<semaphore_mem>>
        tpu.enqueue_dma source(%50 : memref<64x128xf32, #tpu.memory_space<any>>) target(%52 : memref<64x128xf32, #tpu.memory_space<vmem>>) target_semaphore(%54 : memref<!tpu.dma_semaphore, #tpu.memory_space<semaphore_mem>>)
      } else {
      }
      %c2_i32_19 = arith.constant 2 : i32
      %47 = arith.cmpi eq, %40, %c2_i32_19 : i32
      %48 = arith.extui %47 : i1 to i32
      %c0_i32_20 = arith.constant 0 : i32
      %49 = arith.cmpi ne, %48, %c0_i32_20 : i32
      scf.if %49 {
        %c0_i32_21 = arith.constant 0 : i32
        %50 = tpu.memref_slice %arg10[%38, %c0_i32_21] : memref<72x128xf32, #tpu.memory_space<any>> -> memref<64x128xf32, #tpu.memory_space<any>>
        %c0_i32_22 = arith.constant 0 : i32
        %c0_i32_23 = arith.constant 0 : i32
        %51 = tpu.memref_slice %arg12[%36, %c0_i32_22, %c0_i32_23] : memref<2x64x128xf32, #tpu.memory_space<vmem>> -> memref<1x64x128xf32, #tpu.memory_space<vmem>>
        %52 = tpu.memref_squeeze %51 : memref<1x64x128xf32, #tpu.memory_space<vmem>> -> memref<64x128xf32, #tpu.memory_space<vmem>>
        %53 = tpu.memref_slice %arg13[%36] : memref<2x!tpu.dma_semaphore, #tpu.memory_space<semaphore_mem>> -> memref<1x!tpu.dma_semaphore, #tpu.memory_space<semaphore_mem>>
        %54 = tpu.memref_squeeze %53 : memref<1x!tpu.dma_semaphore, #tpu.memory_space<semaphore_mem>> -> memref<!tpu.dma_semaphore, #tpu.memory_space<semaphore_mem>>
        tpu.enqueue_dma source(%50 : memref<64x128xf32, #tpu.memory_space<any>>) target(%52 : memref<64x128xf32, #tpu.memory_space<vmem>>) target_semaphore(%54 : memref<!tpu.dma_semaphore, #tpu.memory_space<semaphore_mem>>)
      } else {
      }
    } else {
    }
    %13 = arith.index_cast %arg0 : i32 to index
    %14 = memref.load %arg6[%13] : memref<5xi32, #tpu.memory_space<smem>>
    %c1_i32_6 = arith.constant 1 : i32
    %15 = arith.cmpi eq, %14, %c1_i32_6 : i32
    %16 = arith.extui %15 : i1 to i32
    %c0_i32_7 = arith.constant 0 : i32
    %17 = arith.cmpi ne, %16, %c0_i32_7 : i32
    scf.if %17 {
      %cst = arith.constant 0.000000e+00 : f32
      %35 = vector.broadcast %cst : f32 to vector<8x128xf32>
      %c0 = arith.constant 0 : index
      %c0_13 = arith.constant 0 : index
      %36 = vector.load %arg14[%c0, %c0_13] : memref<8x128xf32, #tpu.memory_space<vmem>>, vector<8x128xf32>
      tpu.vector_store %arg14[%c0, %c0_13], %35 {strides = array<i32>} : memref<8x128xf32, #tpu.memory_space<vmem>>, vector<8x128xf32>,
    } else {
    }
    %18 = arith.index_cast %arg0 : i32 to index
    %19 = memref.load %arg3[%18] : memref<5xi32, #tpu.memory_space<smem>>
    %20 = arith.index_cast %arg0 : i32 to index
    %21 = memref.load %arg4[%20] : memref<5xi32, #tpu.memory_space<smem>>
    %c0_i32_8 = arith.constant 0 : i32
    %22 = arith.cmpi eq, %19, %c0_i32_8 : i32
    %c64_i32 = arith.constant 64 : i32
    %23 = arith.cmpi eq, %21, %c64_i32 : i32
    %24 = arith.andi %22, %23 : i1
    %25 = arith.extui %24 : i1 to i32
    %c0_i32_9 = arith.constant 0 : i32
    %26 = arith.cmpi ne, %25, %c0_i32_9 : i32
    scf.if %26 {
      %c0_i32_13 = arith.constant 0 : i32
      %c64_i32_14 = arith.constant 64 : i32
      %35 = arith.muli %c0_i32_13, %c64_i32_14 : i32
      %36 = tpu.assume_multiple %35, 64 : i32
      %c0_i32_15 = arith.constant 0 : i32
      %c0_i32_16 = arith.constant 0 : i32
      %37 = tpu.memref_slice %arg12[%0, %c0_i32_15, %c0_i32_16] : memref<2x64x128xf32, #tpu.memory_space<vmem>> -> memref<1x64x128xf32, #tpu.memory_space<vmem>>
      %38 = tpu.memref_squeeze %37 : memref<1x64x128xf32, #tpu.memory_space<vmem>> -> memref<64x128xf32, #tpu.memory_space<vmem>>
      %39 = arith.index_cast %36 : i32 to index
      %c0 = arith.constant 0 : index
      %40 = vector.load %38[%39, %c0] : memref<64x128xf32, #tpu.memory_space<vmem>>, vector<64x128xf32>
      %c0_17 = arith.constant 0 : index
      %c0_18 = arith.constant 0 : index
      %41 = vector.load %arg14[%c0_17, %c0_18] : memref<8x128xf32, #tpu.memory_space<vmem>>, vector<8x128xf32>
      %42 = arith.mulf %40, %40 : vector<64x128xf32>
      %43 = vector.shape_cast %42 : vector<64x128xf32> to vector<8x8x128xf32>
      %cst = arith.constant dense<0.000000e+00> : vector<8x128xf32>
      %44 = vector.multi_reduction <add>, %43, %cst [0] : vector<8x8x128xf32> to vector<8x128xf32>
      %45 = arith.addf %41, %44 : vector<8x128xf32>
      %c0_19 = arith.constant 0 : index
      %c0_20 = arith.constant 0 : index
      %46 = vector.load %arg14[%c0_19, %c0_20] : memref<8x128xf32, #tpu.memory_space<vmem>>, vector<8x128xf32>
      tpu.vector_store %arg14[%c0_19, %c0_20], %45 {strides = array<i32>} : memref<8x128xf32, #tpu.memory_space<vmem>>, vector<8x128xf32>,
      %c1_i32_21 = arith.constant 1 : i32
    } else {
    }
    %true = arith.constant true
    %27 = arith.xori %24, %true : i1
    %28 = arith.extui %27 : i1 to i32
    %c0_i32_10 = arith.constant 0 : i32
    %29 = arith.cmpi ne, %28, %c0_i32_10 : i32
    scf.if %29 {
      %35 = tpu.iota {dimensions = array<i32: 0>} : vector<64x128xi32>
      %c0_i32_13 = arith.constant 0 : i32
      %c64_i32_14 = arith.constant 64 : i32
      %36 = arith.muli %c0_i32_13, %c64_i32_14 : i32
      %37 = tpu.assume_multiple %36, 64 : i32
      %c0_i32_15 = arith.constant 0 : i32
      %c0_i32_16 = arith.constant 0 : i32
      %38 = tpu.memref_slice %arg12[%0, %c0_i32_15, %c0_i32_16] : memref<2x64x128xf32, #tpu.memory_space<vmem>> -> memref<1x64x128xf32, #tpu.memory_space<vmem>>
      %39 = tpu.memref_squeeze %38 : memref<1x64x128xf32, #tpu.memory_space<vmem>> -> memref<64x128xf32, #tpu.memory_space<vmem>>
      %40 = arith.index_cast %37 : i32 to index
      %c0 = arith.constant 0 : index
      %41 = vector.load %39[%40, %c0] : memref<64x128xf32, #tpu.memory_space<vmem>>, vector<64x128xf32>
      %42 = vector.broadcast %37 : i32 to vector<64x128xi32>
      %43 = arith.addi %35, %42 : vector<64x128xi32>
      %44 = vector.broadcast %19 : i32 to vector<64x128xi32>
      %45 = arith.cmpi sge, %43, %44 : vector<64x128xi32>
      %46 = vector.broadcast %21 : i32 to vector<64x128xi32>
      %47 = arith.cmpi slt, %43, %46 : vector<64x128xi32>
      %48 = arith.andi %45, %47 : vector<64x128xi1>
      %cst = arith.constant 0.000000e+00 : f32
      %49 = vector.broadcast %cst : f32 to vector<64x128xf32>
      %50 = arith.select %48, %41, %49 : vector<64x128xi1>, vector<64x128xf32>
      %c0_17 = arith.constant 0 : index
      %c0_18 = arith.constant 0 : index
      %51 = vector.load %arg14[%c0_17, %c0_18] : memref<8x128xf32, #tpu.memory_space<vmem>>, vector<8x128xf32>
      %52 = arith.mulf %50, %50 : vector<64x128xf32>
      %53 = vector.shape_cast %52 : vector<64x128xf32> to vector<8x8x128xf32>
      %cst_19 = arith.constant dense<0.000000e+00> : vector<8x128xf32>
      %54 = vector.multi_reduction <add>, %53, %cst_19 [0] : vector<8x8x128xf32> to vector<8x128xf32>
      %55 = arith.addf %51, %54 : vector<8x128xf32>
      %c0_20 = arith.constant 0 : index
      %c0_21 = arith.constant 0 : index
      %56 = vector.load %arg14[%c0_20, %c0_21] : memref<8x128xf32, #tpu.memory_space<vmem>>, vector<8x128xf32>
      tpu.vector_store %arg14[%c0_20, %c0_21], %55 {strides = array<i32>} : memref<8x128xf32, #tpu.memory_space<vmem>>, vector<8x128xf32>,
      %c1_i32_22 = arith.constant 1 : i32
    } else {
    }
    %30 = arith.index_cast %arg0 : i32 to index
    %31 = memref.load %arg7[%30] : memref<5xi32, #tpu.memory_space<smem>>
    %c1_i32_11 = arith.constant 1 : i32
    %32 = arith.cmpi eq, %31, %c1_i32_11 : i32
    %33 = arith.extui %32 : i1 to i32
    %c0_i32_12 = arith.constant 0 : i32
    %34 = arith.cmpi ne, %33, %c0_i32_12 : i32
    scf.if %34 {
      %c0 = arith.constant 0 : index
      %c0_13 = arith.constant 0 : index
      %35 = vector.load %arg14[%c0, %c0_13] : memref<8x128xf32, #tpu.memory_space<vmem>>, vector<8x128xf32>
      %36 = vector.shape_cast %35 : vector<8x128xf32> to vector<1x8x128xf32>
      %cst = arith.constant dense<0.000000e+00> : vector<1xf32>
      %37 = vector.multi_reduction <add>, %36, %cst [1, 2] : vector<1x8x128xf32> to vector<1xf32>
      %38 = vector.shape_cast %37 : vector<1xf32> to vector<1x1x1xf32>
      %39 = vector.extract %38[0, 0, 0] : f32 from vector<1x1x1xf32>
      %40 = arith.index_cast %arg0 : i32 to index
      %41 = memref.load %arg5[%40] : memref<5xi32, #tpu.memory_space<smem>>
      %42 = arith.index_cast %41 : i32 to index
      %c0_14 = arith.constant 0 : index
      %43 = memref.load %arg11[%42, %c0_14] : memref<4x1xf32, #tpu.memory_space<smem>>
      memref.store %39, %arg11[%42, %c0_14] : memref<4x1xf32, #tpu.memory_space<smem>>
    } else {
    }
    return
  }
  func.func @transform_3(%arg0: i32, %arg1: memref<5xi32, #tpu.memory_space<smem>>, %arg2: memref<5xi32, #tpu.memory_space<smem>>, %arg3: memref<5xi32, #tpu.memory_space<smem>>, %arg4: memref<5xi32, #tpu.memory_space<smem>>, %arg5: memref<5xi32, #tpu.memory_space<smem>>, %arg6: memref<5xi32, #tpu.memory_space<smem>>, %arg7: memref<5xi32, #tpu.memory_space<smem>>) -> (i32, i32) {
    %c0_i32 = arith.constant 0 : i32
    %c0_i32_0 = arith.constant 0 : i32
    %c0_i32_1 = arith.constant 0 : i32
    return %c0_i32, %c0_i32_0 : i32, i32
  }
}

</mosaic_0001>

<bundles_post_ra>
// kernel: _regularization_loss_impl.1
= control target key start
LH: loop header
LB: loop body
LE: loop exit
PB: predicated region body
PF: predicated region fallthrough
CT: control target
= control target key end

     0   :  { %s1097_s0 = inlined_call_operand.vmem [shape: s32[5], index: 0, kind: input, shape index: {}]   ;;  %s1098_s7 = inlined_call_operand.vmem [shape: f32[96,128], index: 7, kind: input, shape index: {}]   ;;  %s1099_s8 = inlined_call_operand.vmem [shape: f32[64,128], index: 8, kind: input, shape index: {}]   ;;  %s1100_s9 = inlined_call_operand.vmem [shape: f32[72,128], index: 9, kind: input, shape index: {}]   ;;  %s1101_s10 = inlined_call_operand.vmem [shape: f32[4,1], index: 10, kind: output, shape index: {}]   ;;  %s1102_s1 = inlined_call_operand.vmem [shape: s32[5], index: 1, kind: input, shape index: {}]   ;;  %s1103_s2 = inlined_call_operand.vmem [shape: s32[5], index: 2, kind: input, shape index: {}]   ;;  %s1104_s3 = inlined_call_operand.vmem [shape: s32[5], index: 3, kind: input, shape index: {}]   ;;  %s1105_s4 = inlined_call_operand.vmem [shape: s32[5], index: 4, kind: input, shape index: {}]   ;;  %s1106_s5 = inlined_call_operand.vmem [shape: s32[5], index: 5, kind: input, shape index: {}]   ;;  %s1107_s6 = inlined_call_operand.vmem [shape: s32[5], index: 6, kind: input, shape index: {}]  }
   0x1   :  { %s15_s15 = sshll.u32 %s1097_s0, 4  ;;  %s19_s18 = sshll.u32 %s1102_s1, 4  ;;  %s16_s15 = int_to_ptr.vmem [resolvable:$true] %s15_s15  ;;  %s20_s18 = int_to_ptr.vmem [resolvable:$true] %s19_s18 }
   0x2   :  { %s773_s19 = scalar_lea.vmem %s16_s15, 16  ;;  %p778_p1 = scmp.lt.s32.totalorder %s16_s15, %s16_s15 }
   0x3   :  { %p774_p0 = scmp.ne.s32.totalorder %s16_s15, %s773_s19  ;;  %p779_p2 = scmp.lt.s32.totalorder %s773_s19, %s773_s19 }
   0x5   :  { %p780_p3 = por %p779_p2, %p778_p1 }
   0x7   :  { %p781_p4 = pnand %p780_p3, %p774_p0 }
   0x9   :  { %784 = shalt.err (!%p781_p4)  }
   0xa   :  { %s887_s20 = smov [#allocation6]   ;;  %s785_s21 = scalar_lea.vmem %s20_s18, 16 }
   0xb   :  { %18 = dma.vmem_to_smem %s16_s15, 16, %s887_s20, [#allocation5] }
   0xc   :  { %p786_p5 = scmp.ne.s32.totalorder %s20_s18, %s785_s21  ;;  %p790_p6 = scmp.lt.s32.totalorder %s20_s18, %s20_s18 }
   0xd   :  { %p791_p7 = scmp.lt.s32.totalorder %s785_s21, %s785_s21 }
   0xf   :  { %p792_p8 = por %p791_p7, %p790_p6 }
  0x11   :  { %p793_p9 = pnand %p792_p8, %p786_p5 }
  0x13   :  { %796 = shalt.err (!%p793_p9)  }
  0x14   :  { %s888_s0 = smov [#allocation7]   ;;  %s23_s23 = sshll.u32 %s1103_s2, 4  ;;  %s24_s23 = int_to_ptr.vmem [resolvable:$true] %s23_s23 }
  0x15   :  { %22 = dma.vmem_to_smem %s20_s18, 16, %s888_s0, [#allocation5] }
  0x16   :  { %s27_s26 = sshll.u32 %s1104_s3, 4  ;;  %s797_s27 = scalar_lea.vmem %s24_s23, 16  ;;  %s28_s26 = int_to_ptr.vmem [resolvable:$true] %s27_s26 }
  0x17   :  { %p798_p10 = scmp.ne.s32.totalorder %s24_s23, %s797_s27  ;;  %p802_p11 = scmp.lt.s32.totalorder %s24_s23, %s24_s23 }
  0x18   :  { %p803_p12 = scmp.lt.s32.totalorder %s797_s27, %s797_s27 }
  0x1a   :  { %p804_p13 = por %p803_p12, %p802_p11 }
  0x1c   :  { %p805_p0 = pnand %p804_p13, %p798_p10 }
  0x1e   :  { %808 = shalt.err (!%p805_p0)  }
  0x1f   :  { %s889_s28 = smov [#allocation8]   ;;  %s809_s29 = scalar_lea.vmem %s28_s26, 16 }
  0x20   :  { %26 = dma.vmem_to_smem %s24_s23, 16, %s889_s28, [#allocation5] }
  0x21   :  { %p810_p1 = scmp.ne.s32.totalorder %s28_s26, %s809_s29  ;;  %p814_p2 = scmp.lt.s32.totalorder %s28_s26, %s28_s26 }
  0x22   :  { %p815_p3 = scmp.lt.s32.totalorder %s809_s29, %s809_s29 }
  0x24   :  { %p816_p4 = por %p815_p3, %p814_p2 }
  0x26   :  { %p817_p5 = pnand %p816_p4, %p810_p1 }
  0x28   :  { %820 = shalt.err (!%p817_p5)  }
  0x29   :  { %s890_s2 = smov [#allocation9]   ;;  %s31_s11 = sshll.u32 %s1105_s4, 4  ;;  %s32_s11 = int_to_ptr.vmem [resolvable:$true] %s31_s11 }
  0x2a   :  { %30 = dma.vmem_to_smem %s28_s26, 16, %s890_s2, [#allocation5] }
  0x2b   :  { %s35_s14 = sshll.u32 %s1106_s5, 4  ;;  %s821_s15 = scalar_lea.vmem %s32_s11, 16  ;;  %s36_s14 = int_to_ptr.vmem [resolvable:$true] %s35_s14 }
  0x2c   :  { %p822_p6 = scmp.ne.s32.totalorder %s32_s11, %s821_s15  ;;  %p826_p7 = scmp.lt.s32.totalorder %s32_s11, %s32_s11 }
  0x2d   :  { %p827_p8 = scmp.lt.s32.totalorder %s821_s15, %s821_s15 }
  0x2f   :  { %p828_p9 = por %p827_p8, %p826_p7 }
  0x31   :  { %p829_p10 = pnand %p828_p9, %p822_p6 }
  0x33   :  { %832 = shalt.err (!%p829_p10)  }
  0x34   :  { %s891_s16 = smov [#allocation10]   ;;  %s833_s17 = scalar_lea.vmem %s36_s14, 16 }
  0x35   :  { %34 = dma.vmem_to_smem %s32_s11, 16, %s891_s16, [#allocation5] }
  0x36   :  { %p834_p11 = scmp.ne.s32.totalorder %s36_s14, %s833_s17  ;;  %p838_p12 = scmp.lt.s32.totalorder %s36_s14, %s36_s14 }
  0x37   :  { %p839_p13 = scmp.lt.s32.totalorder %s833_s17, %s833_s17 }
  0x39   :  { %p840_p0 = por %p839_p13, %p838_p12 }
  0x3b   :  { %p841_p1 = pnand %p840_p0, %p834_p11 }
  0x3d   :  { %844 = shalt.err (!%p841_p1)  }
  0x3e   :  { %s892_s4 = smov [#allocation11]   ;;  %s39_s19 = sshll.u32 %s1107_s6, 4  ;;  %s40_s19 = int_to_ptr.vmem [resolvable:$true] %s39_s19 }
  0x3f   :  { %38 = dma.vmem_to_smem %s36_s14, 16, %s892_s4, [#allocation5] }
  0x40   :  { %s845_s20 = scalar_lea.vmem %s40_s19, 16  ;;  %p850_p3 = scmp.lt.s32.totalorder %s40_s19, %s40_s19 }
  0x41   :  { %p846_p2 = scmp.ne.s32.totalorder %s40_s19, %s845_s20  ;;  %p851_p4 = scmp.lt.s32.totalorder %s845_s20, %s845_s20 }
  0x43   :  { %p852_p5 = por %p851_p4, %p850_p3 }
  0x45   :  { %p853_p6 = pnand %p852_p5, %p846_p2 }
  0x47   :  { %856 = shalt.err (!%p853_p6)  }
  0x48   :  { %s893_s21 = smov [#allocation12]  }
  0x49   :  { %42 = dma.vmem_to_smem %s40_s19, 16, %s893_s21, [#allocation5] }
  0x4a   :  { %875 = dma.done.wait [#allocation5], 112 }
  0x4b   :  { %876 = vsyncadd [#allocation5], 4294967184 }
  0x4c   :  { %44 = sfence }
  0x4d   :  { %45 = vsyncpa [#allocation14], 0  ;;  %s972_s0 = smov 0  }
  0x4e LB: > { %p725_p7 = scmp.ge.s32.totalorder %s885_s0, 5  ;;  %s885_s0 = sphi %s972_s0, %s51_s0  }
  0x4f   : > { %p74_p8 = scmp.lt.s32.totalorder (!%p725_p7), %s885_s0, 0  ;;  %s75_s6 = ssub.s32 (!%p725_p7), 0, %s885_s0 }
  0x50   : > { %71 = sbr.rel (%p725_p7) target bundleno = 470 (0x1d6), region = 12  ;;  %s726_s1 = smin.u32 (!%p725_p7), %s885_s0, %s75_s6 }
  0x51   : > { %s77_s22 = sand.u32 (!%p725_p7), 1, %s726_s1   ;;  %p727_p9 = scmp.ne.s32.totalorder (!%p725_p7), %s885_s0, 0 }
  0x52   : > { %s78_s23 = ssub.s32 (!%p725_p7), 0, %s77_s22 }
  0x57   : > { %s1112_s23 = smov (!%p74_p8, %s78_s23), %s77_s22  ;;  %83 = sbr.rel (%p727_p9) target bundleno = 125 (0x7d), region = 16 }
  0x58   : > { %s984_s24 = sld [smem:[#allocation7]] (!%p727_p9) }
  0x59   : > { %s986_s25 = sld [smem:[#allocation6]] (!%p727_p9) }
  0x5f   : > { %p728_p10 = scmp.ne.s32.totalorder %s986_s25, 0 }
  0x60   : > { %s90_s28 = scalar_lea.vmem (!%p728_p10), %s1098_s7, %s984_s24 }
  0x61   : > { %89 = sbr.rel (%p728_p10) target bundleno = 105 (0x69), region = 20  ;;  %v123_v0 = vld [vmem:[%s90_s28] sm:$0xff] (!%p728_p10)  ;;  %v125_v1 = vld [vmem:[%s90_s28 + $0x8] sm:$0xff] (!%p728_p10)  ;;  %v127_v2 = vld [vmem:[%s90_s28 + $0x10] sm:$0xff] (!%p728_p10) }
  0x62   : > { %124 = vst [vmem:[#allocation2] sm:$0xff] (!%p728_p10), %v123_v0  ;;  %126 = vst [vmem:[#allocation2 + $0x8] sm:$0xff] (!%p728_p10), %v125_v1  ;;  %v129_v3 = vld [vmem:[%s90_s28 + $0x18] sm:$0xff] (!%p728_p10)  ;;  %v131_v4 = vld [vmem:[%s90_s28 + $0x20] sm:$0xff] (!%p728_p10) }
  0x63   : > { %128 = vst [vmem:[#allocation2 + $0x10] sm:$0xff] (!%p728_p10), %v127_v2  ;;  %v133_v5 = vld [vmem:[%s90_s28 + $0x28] sm:$0xff] (!%p728_p10)  ;;  %130 = vst [vmem:[#allocation2 + $0x18] sm:$0xff] (!%p728_p10), %v129_v3  ;;  %v135_v6 = vld [vmem:[%s90_s28 + $0x30] sm:$0xff] (!%p728_p10) }
  0x64   : > { %132 = vst [vmem:[#allocation2 + $0x20] sm:$0xff] (!%p728_p10), %v131_v4  ;;  %134 = vst [vmem:[#allocation2 + $0x28] sm:$0xff] (!%p728_p10), %v133_v5  ;;  %v137_v7 = vld [vmem:[%s90_s28 + $0x38] sm:$0xff] (!%p728_p10) }
  0x65   : > { %136 = vst [vmem:[#allocation2 + $0x30] sm:$0xff] (!%p728_p10), %v135_v6  ;;  %138 = vst [vmem:[#allocation2 + $0x38] sm:$0xff] (!%p728_p10), %v137_v7 }
  0x68   : > { %146 = vsyncadd [#allocation3], 1024 }
  0x69 PF: > { %p729_p11 = scmp.ne.s32.totalorder %s986_s25, 1 }
  0x6a   : > { %s151_s3 = scalar_lea.vmem (!%p729_p11), %s1099_s8, %s984_s24 }
  0x6b   : > { %150 = sbr.rel (%p729_p11) target bundleno = 115 (0x73), region = 58  ;;  %v184_v8 = vld [vmem:[%s151_s3] sm:$0xff] (!%p729_p11)  ;;  %v186_v9 = vld [vmem:[%s151_s3 + $0x8] sm:$0xff] (!%p729_p11)  ;;  %v188_v10 = vld [vmem:[%s151_s3 + $0x10] sm:$0xff] (!%p729_p11) }
  0x6c   : > { %185 = vst [vmem:[#allocation2] sm:$0xff] (!%p729_p11), %v184_v8  ;;  %187 = vst [vmem:[#allocation2 + $0x8] sm:$0xff] (!%p729_p11), %v186_v9  ;;  %v190_v11 = vld [vmem:[%s151_s3 + $0x18] sm:$0xff] (!%p729_p11)  ;;  %v192_v12 = vld [vmem:[%s151_s3 + $0x20] sm:$0xff] (!%p729_p11) }
  0x6d   : > { %189 = vst [vmem:[#allocation2 + $0x10] sm:$0xff] (!%p729_p11), %v188_v10  ;;  %v194_v13 = vld [vmem:[%s151_s3 + $0x28] sm:$0xff] (!%p729_p11)  ;;  %191 = vst [vmem:[#allocation2 + $0x18] sm:$0xff] (!%p729_p11), %v190_v11  ;;  %v196_v14 = vld [vmem:[%s151_s3 + $0x30] sm:$0xff] (!%p729_p11) }
  0x6e   : > { %193 = vst [vmem:[#allocation2 + $0x20] sm:$0xff] (!%p729_p11), %v192_v12  ;;  %195 = vst [vmem:[#allocation2 + $0x28] sm:$0xff] (!%p729_p11), %v194_v13  ;;  %v198_v15 = vld [vmem:[%s151_s3 + $0x38] sm:$0xff] (!%p729_p11) }
  0x6f   : > { %197 = vst [vmem:[#allocation2 + $0x30] sm:$0xff] (!%p729_p11), %v196_v14  ;;  %199 = vst [vmem:[#allocation2 + $0x38] sm:$0xff] (!%p729_p11), %v198_v15 }
  0x72   : > { %207 = vsyncadd [#allocation3], 1024 }
  0x73 PF: > { %p730_p12 = scmp.ne.s32.totalorder %s986_s25, 2 }
  0x74   : > { %s212_s12 = scalar_lea.vmem (!%p730_p12), %s1100_s9, %s984_s24 }
  0x75   : > { %211 = sbr.rel (%p730_p12) target bundleno = 125 (0x7d), region = 96  ;;  %v245_v16 = vld [vmem:[%s212_s12] sm:$0xff] (!%p730_p12)  ;;  %v247_v17 = vld [vmem:[%s212_s12 + $0x8] sm:$0xff] (!%p730_p12)  ;;  %v249_v18 = vld [vmem:[%s212_s12 + $0x10] sm:$0xff] (!%p730_p12) }
  0x76   : > { %246 = vst [vmem:[#allocation2] sm:$0xff] (!%p730_p12), %v245_v16  ;;  %248 = vst [vmem:[#allocation2 + $0x8] sm:$0xff] (!%p730_p12), %v247_v17  ;;  %v251_v19 = vld [vmem:[%s212_s12 + $0x18] sm:$0xff] (!%p730_p12)  ;;  %v253_v20 = vld [vmem:[%s212_s12 + $0x20] sm:$0xff] (!%p730_p12) }
  0x77   : > { %250 = vst [vmem:[#allocation2 + $0x10] sm:$0xff] (!%p730_p12), %v249_v18  ;;  %v255_v21 = vld [vmem:[%s212_s12 + $0x28] sm:$0xff] (!%p730_p12)  ;;  %252 = vst [vmem:[#allocation2 + $0x18] sm:$0xff] (!%p730_p12), %v251_v19  ;;  %v257_v22 = vld [vmem:[%s212_s12 + $0x30] sm:$0xff] (!%p730_p12) }
  0x78   : > { %254 = vst [vmem:[#allocation2 + $0x20] sm:$0xff] (!%p730_p12), %v253_v20  ;;  %256 = vst [vmem:[#allocation2 + $0x28] sm:$0xff] (!%p730_p12), %v255_v21  ;;  %v259_v23 = vld [vmem:[%s212_s12 + $0x38] sm:$0xff] (!%p730_p12) }
  0x79   : > { %258 = vst [vmem:[#allocation2 + $0x30] sm:$0xff] (!%p730_p12), %v257_v22  ;;  %260 = vst [vmem:[#allocation2 + $0x38] sm:$0xff] (!%p730_p12), %v259_v23 }
  0x7c   : > { %268 = vsyncadd [#allocation3], 1024 }
  0x7d PF: > { %s731_s13 = sshll.u32 %s1112_s23, 6  ;;  %s271_s15 = scalar_lea.sflag [#allocation3], %s1112_s23 }
  0x7e   : > { %s1004_s14 = scalar_lea.vmem [#allocation2], %s731_s13 }
  0x7f   : > { %877 = dma.done.wait %s271_s15, 1024 }
  0x80   : > { %878 = vsyncadd %s271_s15, 4294966272  ;;  %s275_s16 = sadd.s32 1, %s885_s0 }
  0x81   : > { %p732_p13 = scmp.ge.s32.totalorder %s275_s16, 5 }
  0x82   : > { %s1009_s17 = ssub.s32 (!%p732_p13), 1, %s1112_s23  ;;  %s1011_s4 = sld [smem:[#allocation7 + %s275_s16]] (!%p732_p13) }
  0x83   : > { %279 = sbr.rel (%p732_p13) target bundleno = 167 (0xa7), region = 134  ;;  %s1013_s5 = sld [smem:[#allocation6 + %s275_s16]] (!%p732_p13) }
  0x89   : > { %p733_p0 = scmp.ne.s32.totalorder (!%p732_p13), %s1013_s5, 0 }
  0x8a   : > { %s287_s20 = scalar_lea.vmem (!%p733_p0), %s1098_s7, %s1011_s4  ;;  %s734_s21 = sshll.u32 (!%p733_p0), %s1009_s17, 6 }
  0x8b   : > { %286 = sbr.rel (%p733_p0) target bundleno = 147 (0x93), region = 138  ;;  %v323_v24 = vld [vmem:[%s287_s20] sm:$0xff] (!%p733_p0)  ;;  %v325_v25 = vld [vmem:[%s287_s20 + $0x8] sm:$0xff] (!%p733_p0)  ;;  %v327_v26 = vld [vmem:[%s287_s20 + $0x10] sm:$0xff] (!%p733_p0)  ;;  %s289_s6 = scalar_lea.vmem (!%p733_p0), [#allocation2], %s734_s21 }
  0x8c   : > { %324 = vst [vmem:[%s289_s6] sm:$0xff] (!%p733_p0), %v323_v24  ;;  %326 = vst [vmem:[%s289_s6 + $0x8] sm:$0xff] (!%p733_p0), %v325_v25  ;;  %v329_v27 = vld [vmem:[%s287_s20 + $0x18] sm:$0xff] (!%p733_p0)  ;;  %v331_v28 = vld [vmem:[%s287_s20 + $0x20] sm:$0xff] (!%p733_p0)  ;;  %s290_s1 = scalar_lea.sflag (!%p733_p0), [#allocation3], %s1009_s17 }
  0x8d   : > { %328 = vst [vmem:[%s289_s6 + $0x10] sm:$0xff] (!%p733_p0), %v327_v26  ;;  %v333_v29 = vld [vmem:[%s287_s20 + $0x28] sm:$0xff] (!%p733_p0)  ;;  %330 = vst [vmem:[%s289_s6 + $0x18] sm:$0xff] (!%p733_p0), %v329_v27  ;;  %v335_v30 = vld [vmem:[%s287_s20 + $0x30] sm:$0xff] (!%p733_p0) }
  0x8e   : > { %332 = vst [vmem:[%s289_s6 + $0x20] sm:$0xff] (!%p733_p0), %v331_v28  ;;  %334 = vst [vmem:[%s289_s6 + $0x28] sm:$0xff] (!%p733_p0), %v333_v29  ;;  %v337_v31 = vld [vmem:[%s287_s20 + $0x38] sm:$0xff] (!%p733_p0) }
  0x8f   : > { %336 = vst [vmem:[%s289_s6 + $0x30] sm:$0xff] (!%p733_p0), %v335_v30  ;;  %338 = vst [vmem:[%s289_s6 + $0x38] sm:$0xff] (!%p733_p0), %v337_v31 }
  0x92   : > { %346 = vsyncadd %s290_s1, 1024 }
  0x93 PF: > { %p735_p1 = scmp.ne.s32.totalorder %s1013_s5, 1 }
  0x94   : > { %s351_s24 = scalar_lea.vmem (!%p735_p1), %s1099_s8, %s1011_s4  ;;  %s736_s25 = sshll.u32 (!%p735_p1), %s1009_s17, 6 }
  0x95   : > { %350 = sbr.rel (%p735_p1) target bundleno = 157 (0x9d), region = 176  ;;  %v387_v32 = vld [vmem:[%s351_s24] sm:$0xff] (!%p735_p1)  ;;  %v389_v33 = vld [vmem:[%s351_s24 + $0x8] sm:$0xff] (!%p735_p1)  ;;  %v391_v34 = vld [vmem:[%s351_s24 + $0x10] sm:$0xff] (!%p735_p1)  ;;  %s353_s26 = scalar_lea.vmem (!%p735_p1), [#allocation2], %s736_s25 }
  0x96   : > { %388 = vst [vmem:[%s353_s26] sm:$0xff] (!%p735_p1), %v387_v32  ;;  %390 = vst [vmem:[%s353_s26 + $0x8] sm:$0xff] (!%p735_p1), %v389_v33  ;;  %v393_v35 = vld [vmem:[%s351_s24 + $0x18] sm:$0xff] (!%p735_p1)  ;;  %v395_v36 = vld [vmem:[%s351_s24 + $0x20] sm:$0xff] (!%p735_p1)  ;;  %s354_s27 = scalar_lea.sflag (!%p735_p1), [#allocation3], %s1009_s17 }
  0x97   : > { %392 = vst [vmem:[%s353_s26 + $0x10] sm:$0xff] (!%p735_p1), %v391_v34  ;;  %v397_v37 = vld [vmem:[%s351_s24 + $0x28] sm:$0xff] (!%p735_p1)  ;;  %394 = vst [vmem:[%s353_s26 + $0x18] sm:$0xff] (!%p735_p1), %v393_v35  ;;  %v399_v38 = vld [vmem:[%s351_s24 + $0x30] sm:$0xff] (!%p735_p1) }
  0x98   : > { %396 = vst [vmem:[%s353_s26 + $0x20] sm:$0xff] (!%p735_p1), %v395_v36  ;;  %398 = vst [vmem:[%s353_s26 + $0x28] sm:$0xff] (!%p735_p1), %v397_v37  ;;  %v401_v39 = vld [vmem:[%s351_s24 + $0x38] sm:$0xff] (!%p735_p1) }
  0x99   : > { %400 = vst [vmem:[%s353_s26 + $0x30] sm:$0xff] (!%p735_p1), %v399_v38  ;;  %402 = vst [vmem:[%s353_s26 + $0x38] sm:$0xff] (!%p735_p1), %v401_v39 }
  0x9c   : > { %410 = vsyncadd %s354_s27, 1024 }
  0x9d PF: > { %p737_p2 = scmp.ne.s32.totalorder %s1013_s5, 2 }
  0x9e   : > { %s415_s2 = scalar_lea.vmem (!%p737_p2), %s1100_s9, %s1011_s4  ;;  %s738_s3 = sshll.u32 (!%p737_p2), %s1009_s17, 6 }
  0x9f   : > { %414 = sbr.rel (%p737_p2) target bundleno = 167 (0xa7), region = 214  ;;  %v451_v40 = vld [vmem:[%s415_s2] sm:$0xff] (!%p737_p2)  ;;  %v453_v41 = vld [vmem:[%s415_s2 + $0x8] sm:$0xff] (!%p737_p2)  ;;  %v455_v42 = vld [vmem:[%s415_s2 + $0x10] sm:$0xff] (!%p737_p2)  ;;  %s417_s30 = scalar_lea.vmem (!%p737_p2), [#allocation2], %s738_s3 }
  0xa0   : > { %452 = vst [vmem:[%s417_s30] sm:$0xff] (!%p737_p2), %v451_v40  ;;  %454 = vst [vmem:[%s417_s30 + $0x8] sm:$0xff] (!%p737_p2), %v453_v41  ;;  %v457_v43 = vld [vmem:[%s415_s2 + $0x18] sm:$0xff] (!%p737_p2)  ;;  %v459_v44 = vld [vmem:[%s415_s2 + $0x20] sm:$0xff] (!%p737_p2)  ;;  %s418_s11 = scalar_lea.sflag (!%p737_p2), [#allocation3], %s1009_s17 }
  0xa1   : > { %456 = vst [vmem:[%s417_s30 + $0x10] sm:$0xff] (!%p737_p2), %v455_v42  ;;  %v461_v45 = vld [vmem:[%s415_s2 + $0x28] sm:$0xff] (!%p737_p2)  ;;  %458 = vst [vmem:[%s417_s30 + $0x18] sm:$0xff] (!%p737_p2), %v457_v43  ;;  %v463_v46 = vld [vmem:[%s415_s2 + $0x30] sm:$0xff] (!%p737_p2) }
  0xa2   : > { %460 = vst [vmem:[%s417_s30 + $0x20] sm:$0xff] (!%p737_p2), %v459_v44  ;;  %462 = vst [vmem:[%s417_s30 + $0x28] sm:$0xff] (!%p737_p2), %v461_v45  ;;  %v465_v47 = vld [vmem:[%s415_s2 + $0x38] sm:$0xff] (!%p737_p2) }
  0xa3   : > { %464 = vst [vmem:[%s417_s30 + $0x30] sm:$0xff] (!%p737_p2), %v463_v46  ;;  %466 = vst [vmem:[%s417_s30 + $0x38] sm:$0xff] (!%p737_p2), %v465_v47 }
  0xa6   : > { %474 = vsyncadd %s418_s11, 1024 }
  0xa7 PF: > { %s475_s12 = sld [smem:[#allocation11 + %s885_s0]] }
  0xad   : > { %p739_p3 = scmp.ne.s32.totalorder %s475_s12, 1 }
  0xae   : > { %v894_v48 = vmov (!%p739_p3), 0.0  }
  0xaf   : > { %479 = sbr.rel (%p739_p3) target bundleno = 182 (0xb6), region = 252  ;;  %480 = vst [vmem:[#allocation4] sm:$0xff] (!%p739_p3), %v894_v48 }
  0xb6 PF: > { %s1038_s13 = sld [smem:[#allocation8 + %s885_s0]] }
  0xb7   : > { %s1041_s15 = sld [smem:[#allocation9 + %s885_s0]] }
  0xbc   : > { %p483_p4 = scmp.eq.s32.totalorder %s1038_s13, 0 }
  0xbd   : > { %p484_p5 = scmp.eq.s32.totalorder %s1041_s15, 64 }
  0xbf   : > { %p1045_p6 = pnand %p484_p5, %p483_p4 }
  0xc0   : > { %v489_v49 = vld [vmem:[%s1004_s14] sm:$0xff] (!%p1045_p6)  ;;  %v490_v50 = vld [vmem:[%s1004_s14 + $0x8] sm:$0xff] (!%p1045_p6)  ;;  %v491_v51 = vld [vmem:[%s1004_s14 + $0x10] sm:$0xff] (!%p1045_p6) }
  0xc1   : > { %488 = sbr.rel (%p1045_p6) target bundleno = 212 (0xd4), region = 256  ;;  %v492_v52 = vld [vmem:[%s1004_s14 + $0x18] sm:$0xff] (!%p1045_p6)  ;;  %v498_v53 = vmul.f32 (!%p1045_p6), %v489_v49, %v489_v49  ;;  %v499_v54 = vmul.f32 (!%p1045_p6), %v490_v50, %v490_v50  ;;  %v500_v55 = vmul.f32 (!%p1045_p6), %v491_v51, %v491_v51  ;;  %v493_v56 = vld [vmem:[%s1004_s14 + $0x20] sm:$0xff] (!%p1045_p6)  ;;  %v494_v59 = vld [vmem:[%s1004_s14 + $0x28] sm:$0xff] (!%p1045_p6) }
  0xc2   : > { %v501_v57 = vmul.f32 (!%p1045_p6), %v492_v52, %v492_v52  ;;  %v502_v60 = vmul.f32 (!%p1045_p6), %v493_v56, %v493_v56  ;;  %v495_v62 = vld [vmem:[%s1004_s14 + $0x30] sm:$0xff] (!%p1045_p6)  ;;  %v503_v63 = vmul.f32 (!%p1045_p6), %v494_v59, %v494_v59  ;;  %v496_v1 = vld [vmem:[%s1004_s14 + $0x38] sm:$0xff] (!%p1045_p6)  ;;  %v497_v7 = vld [vmem:[#allocation4] sm:$0xff] (!%p1045_p6) }
  0xc3   : > { %v506_v58 = vadd.f32 (!%p1045_p6), %v499_v54, %v498_v53  ;;  %v504_v2 = vmul.f32 (!%p1045_p6), %v495_v62, %v495_v62  ;;  %v505_v4 = vmul.f32 (!%p1045_p6), %v496_v1, %v496_v1 }
  0xc5   : > { %v507_v61 = vadd.f32 (!%p1045_p6), %v506_v58, %v500_v55 }
  0xc7   : > { %v508_v0 = vadd.f32 (!%p1045_p6), %v507_v61, %v501_v57 }
  0xc9   : > { %v509_v3 = vadd.f32 %v508_v0, %v502_v60 }
  0xcb   : > { %v510_v5 = vadd.f32 %v509_v3, %v503_v63 }
  0xcd   : > { %v511_v6 = vadd.f32 %v510_v5, %v504_v2 }
  0xcf   : > { %v512_v8 = vadd.f32 %v511_v6, %v505_v4 }
  0xd1   : > { %v513_v9 = vadd.f32 %v512_v8, %v497_v7 }
  0xd3   : > { %514 = vst [vmem:[#allocation4] sm:$0xff] %v513_v9 }
  0xd4 PF: > { %517 = sbr.rel (!%p1045_p6) target bundleno = 241 (0xf1), region = 260  ;;  %v518_v10 = vlaneseq (%p1045_p6)  ;;  %v544_v12 = vstv (%p1045_p6), %s1038_s13  ;;  %v553_v16 = vstv (%p1045_p6), %s1041_s15  ;;  %v527_v19 = vld [vmem:[%s1004_s14] sm:$0xff] (%p1045_p6)  ;;  %v528_v22 = vld [vmem:[%s1004_s14 + $0x8] sm:$0xff] (%p1045_p6) }
  0xd5   : > { %v529_v23 = vld [vmem:[%s1004_s14 + $0x10] sm:$0xff] (%p1045_p6)  ;;  %v530_v24 = vld [vmem:[%s1004_s14 + $0x18] sm:$0xff] (%p1045_p6)  ;;  %v531_v26 = vld [vmem:[%s1004_s14 + $0x20] sm:$0xff] (%p1045_p6) }
  0xd6   : > { %v519_v11 = vshrl.u32 (%p1045_p6), %v518_v10, 7  ;;  %v532_v29 = vld [vmem:[%s1004_s14 + $0x28] sm:$0xff] (%p1045_p6)  ;;  %v533_v34 = vld [vmem:[%s1004_s14 + $0x30] sm:$0xff] (%p1045_p6)  ;;  %v534_v39 = vld [vmem:[%s1004_s14 + $0x38] sm:$0xff] (%p1045_p6) }
  0xd8   : > { %v520_v13 = vadd.s32 (%p1045_p6), 8, %v519_v11  ;;  %v521_v14 = vadd.s32 (%p1045_p6), 16, %v519_v11  ;;  %v522_v15 = vadd.s32 (%p1045_p6), 24, %v519_v11  ;;  %v523_v17 = vadd.s32 (%p1045_p6), 32, %v519_v11 }
  0xd9   : > { %vm545_vm0 = vcmp.ge.s32.totalorder (%p1045_p6), %v519_v11, %v544_v12  ;;  %v524_v18 = vadd.s32 (%p1045_p6), 40, %v519_v11  ;;  %v525_v20 = vadd.s32 (%p1045_p6), 48, %v519_v11  ;;  %v526_v21 = vadd.s32 (%p1045_p6), 56, %v519_v11 }
  0xda   : > { %vm546_vm1 = vcmp.ge.s32.totalorder (%p1045_p6), %v520_v13, %v544_v12  ;;  %vm547_vm2 = vcmp.ge.s32.totalorder (%p1045_p6), %v521_v14, %v544_v12  ;;  %vm554_vm3 = vcmp.lt.s32.totalorder (%p1045_p6), %v519_v11, %v553_v16  ;;  %vm555_vm5 = vcmp.lt.s32.totalorder (%p1045_p6), %v520_v13, %v553_v16  ;;  %v578_v51 = vld [vmem:[#allocation4] sm:$0xff] (%p1045_p6) }
  0xdb   : > { %vm556_vm6 = vcmp.lt.s32.totalorder %v521_v14, %v553_v16  ;;  %vm557_vm7 = vcmp.lt.s32.totalorder %v522_v15, %v553_v16  ;;  %vm562_vm8 = vmand %vm545_vm0, %vm554_vm3  ;;  %vm558_vm10 = vcmp.lt.s32.totalorder %v523_v17, %v553_v16  ;;  %vm550_vm12 = vcmp.ge.s32.totalorder %v524_v18, %v544_v12 }
  0xdc   : > { %vm563_vm11 = vmand %vm546_vm1, %vm555_vm5  ;;  %v570_v25 = vsel %vm562_vm8, %v527_v19, 0.0  ;;  %vm559_vm13 = vcmp.lt.s32.totalorder %v524_v18, %v553_v16  ;;  %vm551_vm15 = vcmp.ge.s32.totalorder %v525_v20, %v544_v12  ;;  %vm560_vm4 = vcmp.lt.s32.totalorder %v525_v20, %v553_v16 }
  0xdd   : > { %vm564_vm14 = vmand %vm547_vm2, %vm556_vm6  ;;  %v571_v27 = vsel %vm563_vm11, %v528_v22, 0.0  ;;  %v579_v28 = vmul.f32 %v570_v25, %v570_v25  ;;  %vm1109_vm0 = vcmp.ge.s32.totalorder %v522_v15, %v544_v12  ;;  %vm552_vm9 = vcmp.ge.s32.totalorder %v526_v21, %v544_v12 }
  0xde   : > { %vm565_vm3 = vmand %vm1109_vm0, %vm557_vm7  ;;  %v572_v30 = vsel %vm564_vm14, %v529_v23, 0.0  ;;  %v580_v31 = vmul.f32 %v571_v27, %v571_v27  ;;  %vm561_vm1 = vcmp.lt.s32.totalorder %v526_v21, %v553_v16  ;;  %vm1110_vm5 = vcmp.ge.s32.totalorder %v523_v17, %v544_v12 }
  0xdf   : > { %vm566_vm8 = vmand %vm1110_vm5, %vm558_vm10  ;;  %v573_v32 = vsel %vm565_vm3, %v530_v24, 0.0  ;;  %v581_v33 = vmul.f32 %v572_v30, %v572_v30 }
  0xe0   : > { %vm567_vm2 = vmand %vm550_vm12, %vm559_vm13  ;;  %v574_v35 = vsel %vm566_vm8, %v531_v26, 0.0  ;;  %v582_v36 = vmul.f32 %v573_v32, %v573_v32  ;;  %v587_v37 = vadd.f32 %v580_v31, %v579_v28 }
  0xe1   : > { %vm568_vm6 = vmand %vm551_vm15, %vm560_vm4  ;;  %v575_v38 = vsel %vm567_vm2, %v532_v29, 0.0  ;;  %v583_v40 = vmul.f32 %v574_v35, %v574_v35 }
  0xe2   : > { %vm569_vm7 = vmand %vm552_vm9, %vm561_vm1  ;;  %v588_v41 = vadd.f32 %v587_v37, %v581_v33  ;;  %v576_v42 = vsel %vm568_vm6, %v533_v34, 0.0  ;;  %v584_v43 = vmul.f32 %v575_v38, %v575_v38 }
  0xe3   : > { %v577_v45 = vsel %vm569_vm7, %v534_v39, 0.0  ;;  %v585_v46 = vmul.f32 %v576_v42, %v576_v42 }
  0xe4   : > { %v589_v44 = vadd.f32 %v588_v41, %v582_v36  ;;  %v586_v48 = vmul.f32 %v577_v45, %v577_v45 }
  0xe6   : > { %v590_v47 = vadd.f32 %v589_v44, %v583_v40 }
  0xe8   : > { %v591_v49 = vadd.f32 %v590_v47, %v584_v43 }
  0xea   : > { %v592_v50 = vadd.f32 %v591_v49, %v585_v46 }
  0xec   : > { %v593_v52 = vadd.f32 %v592_v50, %v586_v48 }
  0xee   : > { %v594_v53 = vadd.f32 %v593_v52, %v578_v51 }
  0xf0   : > { %595 = vst [vmem:[#allocation4] sm:$0xff] %v594_v53 }
  0xf1 PF: > { %s596_s17 = sld [smem:[#allocation12 + %s885_s0]] }
  0xf7   : > { %p740_p7 = scmp.ne.s32.totalorder %s596_s17, 1 }
  0xf8   : > { %v601_v54 = vld [vmem:[#allocation4] sm:$0xff] (!%p740_p7)  ;;  %s611_s14 = sld [smem:[#allocation10 + %s885_s0]] (!%p740_p7) }
  0xf9   : > { %600 = sbr.rel (%p740_p7) target bundleno = 454 (0x1c6), region = 264  ;;  %602 = vadd.xlane.f32.xlu0 (!%p740_p7), %v601_v54 }
  0xfe   : > { %s741_s4 = sshll.u32 (!%p740_p7), %s611_s14, 7 }
  0xff   : > { %s613_s18 = scalar_lea.smem (!%p740_p7), [#allocation13], %s741_s4 }
 0x186   : > { %v603_v55 = vpop.xlane.xlu0 %602 }
 0x187   : > { %v604_v56 = vrot.slane %v603_v55, 4 }
 0x189   : > { %v605_v57 = vadd.f32 %v604_v56, %v603_v55 }
 0x18b   : > { %v606_v58 = vrot.slane %v605_v57, 2 }
 0x18d   : > { %v607_v59 = vadd.f32 %v606_v58, %v605_v57 }
 0x18f   : > { %v608_v60 = vrot.slane %v607_v59, 1 }
 0x191   : > { %v609_v61 = vadd.f32 %v608_v60, %v607_v59 }
 0x193   : > { %748 = vpush %v609_v61 }
 0x1c4   : > { %s749_s5 = spop %748 }
 0x1c5   : > { %614 = sst [smem:[%s613_s18]] %s749_s5 }
 0x1c6 PF: > { %p754_p8 = scmp.eq.s32.totalorder %s885_s0, 4  ;;  %s622_s21 = sshll.u32 %s1101_s10, 4  ;;  %s623_s21 = int_to_ptr.vmem [resolvable:$true] %s622_s21 }
 0x1c7   : > { %s857_s6 = scalar_lea.vmem %s623_s21, 64  ;;  %p864_p12 = scmp.lt.s32.totalorder %s623_s21, %s623_s21 }
 0x1c8   : > { %p858_p9 = scmp.ne.s32.totalorder %s623_s21, %s857_s6  ;;  %p865_p13 = scmp.lt.s32.totalorder %s857_s6, %s857_s6 }
 0x1ca   : > { %p859_p10 = pnand %p858_p9, %p754_p8  ;;  %p866_p0 = por %p865_p13, %p864_p12 }
 0x1cc   : > { %p860_p11 = pneg %p859_p10 }
 0x1ce   : > { %p867_p1 = pnand %p866_p0, %p860_p11 }
 0x1d0   : > { %870 = shalt.err (!%p867_p1)
}
 0x1d1   : > { %s895_s1 = smov [#allocation13]  }
 0x1d2   : > { %751 = dma.smem_to_vmem (%p754_p8), %s895_s1, 64, %s623_s21, [#allocation14]  }
 0x1d3   : > { %880 = dma.done.wait (%p754_p8), [#allocation14], 64  }
 0x1d4   : > { %882 = vsyncadd (%p754_p8), [#allocation14], 4294967232 }
 0x1d5   : > { %630 = sfence }
 0x1d6 PF: > { %s51_s0 = sadd.s32 1, %s885_s0  }
 0x1d7   : > { %p48_p2 = scmp.ge.s32.totalorder %s51_s0, 6  }
 0x1d9   :  { %50 = sbr.rel (!%p48_p2) target bundleno = 78 (0x4e), region = 352 }
 0x1e0   :  { %636 = vsyncpa [#allocation14], 1 }
 0x1e1   :  { %638 = vsyncpa [#allocation14 + $0x1], 1 }
 0x1e2   :  { %639 = vsyncmov [#allocation3] }
 0x1e5   :  { %s640_s22 = vpop.sfrf %639 }
 0x1e6   :  { %p746_p3 = scmp.ne.s32.totalorder %s640_s22, 0 }
 0x1e8   :  { %644 = shalt.err (%p746_p3)  }
 0x1e9   :  { %646 = vsyncmov [#allocation3 + $0x1] }
 0x1ec   :  { %s647_s23 = vpop.sfrf %646 }
 0x1ed   :  { %p747_p4 = scmp.ne.s32.totalorder %s647_s23, 0 }
 0x1ef   :  { %651 = shalt.err (%p747_p4)  }

</bundles_post_ra>
